<compile_context>
chip_gen: v5e
topology: v5e:2x2
jax: 0.10.0
libtpu: 0.0.40
codegen_flags: <defaults>
</compile_context>

<pallas_src>
import functools

import jax
import jax.numpy as jnp
from jax import lax
from jax.experimental import pallas as pl
from jax.experimental.pallas import tpu as pltpu


# ------------------------- tuning constants -------------------------
_FUSED_SLAB_BYTES = 6 * 1024 * 1024    # per-image (C, S) slab cutoff for the fused path
_REDUCE_TILE_BYTES = 4 * 1024 * 1024   # pass-1 streaming tile (f32 cast intermediates)
_APPLY_TILE_BYTES = 6 * 1024 * 1024    # pass-2 streaming tile (dtype-preserving multiply)
_VMEM_LIMIT_BYTES = 48 * 1024 * 1024   # safe on v5e/v6e (128 MiB) and v7x (64 MiB)


# ---------------------------------------------------------------------------
# Fused single-pass kernel: mean -> squeeze -> excite -> sigmoid -> multiply
# (one image per grid step; 1 HBM read + 1 HBM write of U total)
# ---------------------------------------------------------------------------
def _fused_kernel(u_ref, w_sq_ref, w_ex_ref, o_ref, *, inv_s):
    # u_ref/o_ref: (1, C, S); w_sq_ref: (C//2, C); w_ex_ref: (C, C//2)
    u = u_ref[0]                                                        # (C, S), streaming dtype
    sums = jnp.sum(u.astype(jnp.float32), axis=1, keepdims=True)        # (C, 1) f32
    z = sums * inv_s                                                    # channel means
    w_sq = w_sq_ref[...].astype(jnp.float32)
    w_ex = w_ex_ref[...].astype(jnp.float32)
    z1 = jnp.dot(w_sq, z, preferred_element_type=jnp.float32)           # (C//2, 1)
    z2 = jnp.dot(w_ex, z1, preferred_element_type=jnp.float32)          # (C, 1)
    gate = jax.nn.sigmoid(z2).astype(o_ref.dtype)                       # (C, 1) in streaming dtype
    o_ref[0] = u * gate


# ---------------------------------------------------------------------------
# Two-pass path, pass 1: per-(n, c) spatial sum (pure f32 reduction)
# ---------------------------------------------------------------------------
def _sum_kernel(u_ref, acc_ref, *, tail):
    # u_ref: (R, tS) tile of the (N*C, S) layout; acc_ref: (R, 1) f32, resident over t
    t = pl.program_id(1)

    @pl.when(t == 0)
    def _():
        acc_ref[...] = jnp.zeros_like(acc_ref)

    if tail:
        last = pl.num_programs(1) - 1

        @pl.when(t == last)
        def _():
            # mask the ragged spatial tail in-kernel (no host-side pad of U)
            col = lax.broadcasted_iota(jnp.int32, u_ref.shape, 1)
            u = jnp.where(col < tail, u_ref[...].astype(jnp.float32), 0.0)
            acc_ref[...] += jnp.sum(u, axis=1, keepdims=True)

        @pl.when(t != last)
        def _():
            acc_ref[...] += jnp.sum(u_ref[...].astype(jnp.float32), axis=1, keepdims=True)
    else:
        acc_ref[...] += jnp.sum(u_ref[...].astype(jnp.float32), axis=1, keepdims=True)


# ---------------------------------------------------------------------------
# Two-pass path, gate: squeeze -> excite -> sigmoid, batched over N (tiny)
# ---------------------------------------------------------------------------
def _gate_batched_kernel(sum_ref, w_sq_ref, w_ex_ref, gate_ref, *, inv_s):
    # sum_ref: (C, N) f32 channel sums; gate_ref: (C, N) in the streaming dtype
    z = sum_ref[...] * inv_s                                            # (C, N) means
    w_sq = w_sq_ref[...].astype(jnp.float32)
    w_ex = w_ex_ref[...].astype(jnp.float32)
    z1 = jnp.dot(w_sq, z, preferred_element_type=jnp.float32)           # (C//2, N)
    z2 = jnp.dot(w_ex, z1, preferred_element_type=jnp.float32)          # (C, N)
    gate_ref[...] = jax.nn.sigmoid(z2).astype(gate_ref.dtype)


# ---------------------------------------------------------------------------
# Two-pass path, pass 2: out = U * gate (streaming dtype, fully parallel)
# ---------------------------------------------------------------------------
def _apply_kernel(gate_ref, u_ref, o_ref):
    # gate_ref: (R, 1) in streaming dtype; u_ref / o_ref: (R, tS)
    o_ref[...] = u_ref[...] * gate_ref[...]


# ------------------------------ tiling helper ------------------------------
def _pick_tiles(rows, cols, itemsize, target_bytes):
    """Pick (R, tS) for the (rows, cols) 2D layout.

    R is a multiple of the dtype sublane count (or == rows), capped so that at
    least two row tiles exist when possible (megacore / 2-TC sharding) and so
    one (R, tS) buffer stays near `target_bytes`. tS is a multiple of 128 (or
    the full spatial extent, which is always legal)."""
    sub = max(8, 32 // itemsize)                 # 8 f32 / 16 bf16 / 32 int8 sublanes
    if rows <= sub:
        r = rows                                 # block dim == full dim: always legal
    else:
        r = max(sub, min((rows // 2) // sub, 16) * sub)
    ts_cap = max(128, (target_bytes // (r * itemsize)) // 128 * 128)
    if ts_cap >= cols:
        ts = cols                                # full spatial extent: always legal
        tail = 0
    else:
        ts = ts_cap                              # multiple of 128
        tail = cols % ts                         # ragged tail, masked in-kernel
    return r, ts, pl.cdiv(rows, r), pl.cdiv(cols, ts), tail


# ------------------------------ dispatch ------------------------------
def _cse_fused(u, w_squeeze, w_excite):
    N, C, H, W = u.shape
    S = H * W
    u3 = u.reshape(N, C, S)                      # free reshape (contiguous dims)
    out = pl.pallas_call(
        functools.partial(_fused_kernel, inv_s=1.0 / float(S)),
        out_shape=jax.ShapeDtypeStruct((N, C, S), u.dtype),
        grid_spec=pltpu.PrefetchScalarGridSpec(
            num_scalar_prefetch=0,
            grid=(N,),
            in_specs=[
                pl.BlockSpec((1, C, S), lambda n: (n, 0, 0)),
                pl.BlockSpec((C // 2, C), lambda n: (0, 0)),
                pl.BlockSpec((C, C // 2), lambda n: (0, 0)),
            ],
            out_specs=pl.BlockSpec((1, C, S), lambda n: (n, 0, 0)),
        ),
        compiler_params=pltpu.CompilerParams(
            dimension_semantics=("parallel",),
            vmem_limit_bytes=_VMEM_LIMIT_BYTES),
    )(u3, w_squeeze, w_excite)
    return out.reshape(N, C, H, W)


def _cse_two_pass(u, w_squeeze, w_excite, *,
                  reduce_tile_bytes=_REDUCE_TILE_BYTES,
                  apply_tile_bytes=_APPLY_TILE_BYTES):
    N, C, H, W = u.shape
    S = H * W
    NC = N * C
    itemsize = jnp.dtype(u.dtype).itemsize
    u2 = u.reshape(NC, S)                        # free reshape; sublane-dense 2D layout

    # ---- pass 1: per-row f32 spatial sums (streaming reduction) ----
    r1, ts1, nr1, nt1, tail1 = _pick_tiles(NC, S, itemsize, reduce_tile_bytes)
    sums = pl.pallas_call(
        functools.partial(_sum_kernel, tail=tail1),
        out_shape=jax.ShapeDtypeStruct((NC, 1), jnp.float32),
        grid_spec=pltpu.PrefetchScalarGridSpec(
            num_scalar_prefetch=0,
            grid=(nr1, nt1),
            in_specs=[pl.BlockSpec((r1, ts1), lambda r, t: (r, t))],
            out_specs=pl.BlockSpec((r1, 1), lambda r, t: (r, 0)),
        ),
        compiler_params=pltpu.CompilerParams(
            dimension_semantics=("parallel", "arbitrary"),
            vmem_limit_bytes=_VMEM_LIMIT_BYTES),
    )(u2)
    # TODO(synk): when NC is tiny and S is huge, pass 1 has a single parallel row
    # tile; a v7x-specific partial-sum group axis could use both TensorCores.

    # ---- gate: batched squeeze->excite->sigmoid over all N at once (tiny) ----
    sums_cn = sums.reshape(N, C).T               # (C, N) f32, lane-dense RHS
    gate_cn = pl.pallas_call(
        functools.partial(_gate_batched_kernel, inv_s=1.0 / float(S)),
        out_shape=jax.ShapeDtypeStruct((C, N), u.dtype),
    )(sums_cn, w_squeeze, w_excite)
    gate_rows = gate_cn.T.reshape(NC, 1)         # (NC, 1), already in streaming dtype

    # ---- pass 2: out = U * gate, fully parallel streaming multiply ----
    r2, ts2, nr2, nt2, _ = _pick_tiles(NC, S, itemsize, apply_tile_bytes)
    out2 = pl.pallas_call(
        _apply_kernel,
        out_shape=jax.ShapeDtypeStruct((NC, S), u.dtype),
        grid_spec=pltpu.PrefetchScalarGridSpec(
            num_scalar_prefetch=0,
            grid=(nr2, nt2),
            in_specs=[
                pl.BlockSpec((r2, 1), lambda r, t: (r, 0)),
                pl.BlockSpec((r2, ts2), lambda r, t: (r, t)),
            ],
            out_specs=pl.BlockSpec((r2, ts2), lambda r, t: (r, t)),
        ),
        compiler_params=pltpu.CompilerParams(
            dimension_semantics=("parallel", "parallel"),
            vmem_limit_bytes=_VMEM_LIMIT_BYTES),
    )(gate_rows, u2)
    return out2.reshape(N, C, H, W)


def cse(u, w_squeeze, w_excite):
    """cSE forward. u: (N, C, H, W); weights are the 1x1 conv kernels squeezed to 2D."""
    N, C, H, W = u.shape
    assert C >= 2, "cSE needs at least 2 channels (Conv_Squeeze has C//2 outputs)"
    S = H * W
    itemsize = jnp.dtype(u.dtype).itemsize
    if C * S * itemsize <= _FUSED_SLAB_BYTES:
        return _cse_fused(u, w_squeeze, w_excite)
    return _cse_two_pass(u, w_squeeze, w_excite)


def _reference(u, w_squeeze, w_excite):
    """Pure-JAX reference mirroring the PyTorch cSE forward."""
    z = jnp.mean(u, axis=(2, 3))                       # (N, C)   avgpool
    z = z @ w_squeeze.T                                # (N, C//2)
    z = z @ w_excite.T                                 # (N, C)
    gate = jax.nn.sigmoid(z)[:, :, None, None]         # (N, C, 1, 1)
    return u * gate


if __name__ == "__main__":
    key = jax.random.PRNGKey(0)
    k_u, k_sq, k_ex, k_u2 = jax.random.split(key, 4)

    # ---- main shapes (takes the fused single-pass fast path) ----
    N, C, H, W = 2, 8, 16, 16
    u = jax.random.normal(k_u, (N, C, H, W), dtype=jnp.float32)
    w_squeeze = jax.random.normal(k_sq, (C // 2, C), dtype=jnp.float32) * 0.3
    w_excite = jax.random.normal(k_ex, (C, C // 2), dtype=jnp.float32) * 0.3

    out = jax.block_until_ready(jax.jit(cse)(u, w_squeeze, w_excite))
    ref = _reference(u, w_squeeze, w_excite)
    assert out.shape == ref.shape
    assert jnp.max(jnp.abs(out - ref)) < 1e-4, "fused path mismatch vs reference"

    # ---- also exercise the streaming two-pass path with tiny tiles so the
    #      in-kernel tail mask and row/col edge blocks are covered ----
    N2, C2, H2, W2 = 3, 4, 10, 20                      # NC=12 (row edge), S=200 (col tail)
    u2 = jax.random.normal(k_u2, (N2, C2, H2, W2), dtype=jnp.float32)
    w_sq2 = jax.random.normal(k_sq, (C2 // 2, C2), dtype=jnp.float32) * 0.3
    w_ex2 = jax.random.normal(k_ex, (C2, C2 // 2), dtype=jnp.float32) * 0.3

    two_pass = jax.jit(functools.partial(_cse_two_pass,
                                         reduce_tile_bytes=4096,
                                         apply_tile_bytes=4096))
    out2 = jax.block_until_ready(two_pass(u2, w_sq2, w_ex2))
    ref2 = _reference(u2, w_sq2, w_ex2)
    assert out2.shape == ref2.shape
    assert jnp.max(jnp.abs(out2 - ref2)) < 1e-4, "two-pass path mismatch vs reference"

    print("KERNEL_OK")
</pallas_src>

<mosaic_0001>
module attributes {stable_mosaic.version = 11 : i64} {
  func.func @_fused_kernel(%arg0: i32, %arg1: memref<1x8x256xf32, #tpu.memory_space<vmem>>, %arg2: memref<4x8xf32, #tpu.memory_space<vmem>>, %arg3: memref<8x4xf32, #tpu.memory_space<vmem>>, %arg4: memref<1x8x256xf32, #tpu.memory_space<vmem>>) attributes {dimension_semantics = [#tpu.dimension_semantics<parallel>], iteration_bounds = array<i64: 2>, scalar_prefetch = 0 : i64, scratch_operands = 0 : i64, tpu.core_type = #tpu.core_type<tc>, window_params = [{transform_indices = @transform_0, window_bounds = array<i64: 1, 8, 256>}, {pipeline_mode = #tpu.pipeline_mode<synchronous>, transform_indices = @transform_1, window_bounds = array<i64: 4, 8>}, {pipeline_mode = #tpu.pipeline_mode<synchronous>, transform_indices = @transform_2, window_bounds = array<i64: 8, 4>}, {transform_indices = @transform_3, window_bounds = array<i64: 1, 8, 256>}]} {
    %c0 = arith.constant 0 : index
    %c0_0 = arith.constant 0 : index
    %c0_1 = arith.constant 0 : index
    %0 = vector.load %arg1[%c0, %c0_0, %c0_1] : memref<1x8x256xf32, #tpu.memory_space<vmem>>, vector<1x8x256xf32>
    %1 = vector.shape_cast %0 : vector<1x8x256xf32> to vector<8x256xf32>
    %cst = arith.constant dense<0.000000e+00> : vector<8xf32>
    %2 = vector.multi_reduction <add>, %1, %cst [1] : vector<8x256xf32> to vector<8xf32>
    %3 = vector.shape_cast %2 : vector<8xf32> to vector<8x1xf32>
    %cst_2 = arith.constant 3.906250e-03 : f32
    %4 = vector.broadcast %cst_2 : f32 to vector<8x1xf32>
    %5 = arith.mulf %3, %4 : vector<8x1xf32>
    %c0_3 = arith.constant 0 : index
    %c0_4 = arith.constant 0 : index
    %6 = vector.load %arg2[%c0_3, %c0_4] : memref<4x8xf32, #tpu.memory_space<vmem>>, vector<4x8xf32>
    %c0_5 = arith.constant 0 : index
    %c0_6 = arith.constant 0 : index
    %7 = vector.load %arg3[%c0_5, %c0_6] : memref<8x4xf32, #tpu.memory_space<vmem>>, vector<8x4xf32>
    %cst_7 = arith.constant dense<0.000000e+00> : vector<4x1xf32>
    %8 = tpu.matmul %6, %5, %cst_7 {dimension_numbers = #tpu.dot_dimension_numbers<[1], [0], [0], [1], [0, 0, 1, 1], [], []>} : vector<4x8xf32>, vector<8x1xf32>, vector<4x1xf32> -> vector<4x1xf32>
    %cst_8 = arith.constant dense<0.000000e+00> : vector<8x1xf32>
    %9 = tpu.matmul %7, %8, %cst_8 {dimension_numbers = #tpu.dot_dimension_numbers<[1], [0], [0], [1], [0, 0, 1, 1], [], []>} : vector<8x4xf32>, vector<4x1xf32>, vector<8x1xf32> -> vector<8x1xf32>
    %10 = arith.negf %9 : vector<8x1xf32>
    %11 = math.exp %10 : vector<8x1xf32>
    %cst_9 = arith.constant 1.000000e+00 : f32
    %12 = vector.broadcast %cst_9 : f32 to vector<8x1xf32>
    %13 = arith.addf %12, %11 : vector<8x1xf32>
    %14 = arith.divf %12, %13 : vector<8x1xf32>
    %15 = vector.broadcast %14 : vector<8x1xf32> to vector<8x256xf32>
    %16 = arith.mulf %1, %15 : vector<8x256xf32>
    %c0_10 = arith.constant 0 : index
    %c0_11 = arith.constant 0 : index
    %c0_12 = arith.constant 0 : index
    %17 = vector.load %arg4[%c0_10, %c0_11, %c0_12] : memref<1x8x256xf32, #tpu.memory_space<vmem>>, vector<1x8x256xf32>
    %18 = vector.shape_cast %17 : vector<1x8x256xf32> to vector<8x256xf32>
    %19 = vector.shape_cast %16 : vector<8x256xf32> to vector<1x8x256xf32>
    tpu.vector_store %arg4[%c0_10, %c0_11, %c0_12], %19 {strides = array<i32>} : memref<1x8x256xf32, #tpu.memory_space<vmem>>, vector<1x8x256xf32>,
    return
  }
  func.func @transform_0(%arg0: i32) -> (i32, i32, i32) {
    %c0_i32 = arith.constant 0 : i32
    %c0_i32_0 = arith.constant 0 : i32
    %c0_i32_1 = arith.constant 0 : i32
    return %arg0, %c0_i32, %c0_i32_0 : i32, i32, i32
  }
  func.func @transform_1(%arg0: i32) -> (i32, i32) {
    %c0_i32 = arith.constant 0 : i32
    %c0_i32_0 = arith.constant 0 : i32
    %c0_i32_1 = arith.constant 0 : i32
    return %c0_i32, %c0_i32_0 : i32, i32
  }
  func.func @transform_2(%arg0: i32) -> (i32, i32) {
    %c0_i32 = arith.constant 0 : i32
    %c0_i32_0 = arith.constant 0 : i32
    %c0_i32_1 = arith.constant 0 : i32
    return %c0_i32, %c0_i32_0 : i32, i32
  }
  func.func @transform_3(%arg0: i32) -> (i32, i32, i32) {
    %c0_i32 = arith.constant 0 : i32
    %c0_i32_0 = arith.constant 0 : i32
    %c0_i32_1 = arith.constant 0 : i32
    return %arg0, %c0_i32, %c0_i32_0 : i32, i32, i32
  }
}

</mosaic_0001>

<bundles_post_ra>
// kernel: cse.1
= control target key start
LH: loop header
LB: loop body
LE: loop exit
PB: predicated region body
PF: predicated region fallthrough
CT: control target
= control target key end

     0   :  { %s374_s12 = smov 0   ;;  %s404_s0 = inlined_call_operand.vmem [shape: f32[2,8,256], index: 0, kind: input, shape index: {}]   ;;  %s405_s1 = inlined_call_operand.vmem [shape: f32[4,8], index: 1, kind: input, shape index: {}]   ;;  %s406_s2 = inlined_call_operand.vmem [shape: f32[8,4], index: 2, kind: input, shape index: {}]   ;;  %s407_s3 = inlined_call_operand.vmem [shape: f32[2,8,256], index: 3, kind: output, shape index: {}]  }
   0x1 LB: > { %s314_s13 = sadd.s32 4294967295, %s351_s12   ;;  %p318_p0 = scmp.ge.s32.totalorder %s351_s12, 1  ;;  %s351_s12 = sphi %s374_s12, %s13_s12  }
   0x2   : > { %p137_p1 = scmp.lt.s32.totalorder %s351_s12, 3 }
   0x4   : > { %p138_p2 = pnand %p318_p0, %p137_p1 }
   0x5   : > { %p161_p3 = scmp.lt.s32.totalorder (!%p138_p2), %s314_s13, 1 }
   0x6   : > { %141 = sbr.rel (%p138_p2) target bundleno = 536 (0x218), region = 32 }
   0xb   : > { %s409_s13 = smov (!%p161_p3, %s314_s13), 1  ;;  %v177_v5 = vld [vmem:[%s405_s1] sm:$0xf]  ;;  %vm179_vm0 = vcmask 64512   ;;  %vm207_vm1 = vcmask 1043456   ;;  %vm203_vm2 = vcmask 31744  }
   0xc   : > { %s329_s14 = sshll.u32 %s409_s13, 4  ;;  %v178_v6 = vld [vmem:[%s406_s2] sm:$0xff]  ;;  %v353_v8 = vmov 0  }
   0xd   : > { %s165_s17 = scalar_lea.vmem %s404_s0, %s329_s14  ;;  %340 = vset.pattern.permute.xlu0 %v353_v8  ;;  %s170_s24 = scalar_lea.vmem %s407_s3, %s329_s14 }
   0xe   : > { %v171_v0 = vld [vmem:[%s165_s17] sm:$0xff]  ;;  %v172_v1 = vld [vmem:[%s165_s17 + $0x8] sm:$0xff] }
   0xf   : > { %v173_v2 = vadd.f32 %v172_v1, %v171_v0 }
  0x11   : > { %174 = vadd.xlane.f32.xlu0 %v173_v2 }
  0x84   : > { %v175_v3 = vpop.xlane.xlu0 %174 }
  0x85   : > { %v176_v4 = vmul.f32 0.00390625, %v175_v3 }
  0x87   : > { %198 = vmatpush.msra.mxu0 %v176_v4 }
  0x88   : > { %323 = vmatmul.msk.f32.vlgmr.msra.gmra.mxu0 %vm179_vm0, %v177_v5 }
 0x105   : > { %v200_v7 = vpop.f32.mrf.mxu0 }
 0x106   : > { %324 = vmatpush.msk.msra.mxu1 %vm207_vm1, %v200_v7 }
 0x107   : > { %325 = vmatmul.msk.f32.vlgmr.msra.gmra.mxu1 %vm203_vm2, %v178_v6 }
 0x184   : > { %v228_v9 = vpop.f32.mrf.mxu1 }
 0x185   : > { %v326_v10 = vmul.f32 -1.442695, %v228_v9 }
 0x187   : > { %341 = vpow2.f32 %v326_v10 }
 0x18d   : > { %v342_v11 = vpop.eup %341 }
 0x18e   : > { %v234_v12 = vadd.f32 1.0, %v342_v11 }
 0x190   : > { %343 = vrcp.f32 %v234_v12  ;;  %v246_v16 = vand.u32 2147483648, %v234_v12  ;;  %v244_v18 = vand.u32 2147483647, %v234_v12  ;;  %vm240_vm4 = vweird.f32 %v234_v12 }
 0x192   : > { %v247_v20 = vor.u32 1.1754944e-38, %v246_v16  ;;  %vm245_vm6 = vcmp.eq.f32.partialorder %v244_v18, 8.507059e+37 }
 0x196   : > { %v344_v13 = vpop.eup %343 }
 0x197   : > { %v236_v14 = vmul.f32 %v344_v13, %v234_v12  ;;  %vm241_vm3 = vweird.f32 %v344_v13 }
 0x198   : > { %vm242_vm5 = vmor %vm240_vm4, %vm241_vm3 }
 0x199   : > { %v237_v15 = vsub.f32 1.0, %v236_v14 }
 0x19b   : > { %v238_v17 = vmul.f32 %v344_v13, %v237_v15 }
 0x19d   : > { %v239_v19 = vadd.f32 %v344_v13, %v238_v17 }
 0x19f   : > { %v243_v21 = vsel %vm242_vm5, %v344_v13, %v239_v19 }
 0x1a0   : > { %v248_v22 = vsel %vm245_vm6, %v247_v20, %v243_v21 }
 0x1a1   : > { %252 = vperm.xlu0 %340, %v248_v22  }
 0x213   : > { %v253_v23 = vpop.permute.xlu0 %252 }
 0x214   : > { %v255_v24 = vmul.f32 %v253_v23, %v171_v0  ;;  %v256_v25 = vmul.f32 %v253_v23, %v172_v1 }
 0x216   : > { %257 = vst [vmem:[%s170_s24] sm:$0xff] %v255_v24 }
 0x217   : > { %258 = vst [vmem:[%s170_s24 + $0x8] sm:$0xff] %v256_v25 }
 0x218 PF: > { %s13_s12 = sadd.s32 1, %s351_s12  }
 0x219   : > { %p10_p4 = scmp.ge.s32.totalorder %s13_s12, 4  }
 0x21b   :  { %12 = sbr.rel (!%p10_p4) target bundleno = 1 (0x1), region = 62 }

</bundles_post_ra>
